<compile_context>
chip_gen: v5e
topology: v5e:2x2
jax: 0.10.0
libtpu: 0.0.40
codegen_flags: <defaults>
</compile_context>

<pallas_src>
import string

import jax
import jax.numpy as jnp
from jax.experimental import pallas as pl
from jax.experimental.pallas import tpu as pltpu

ALL_LETTERS = string.ascii_letters + " .,;'"
N_LETTERS = len(ALL_LETTERS)        # 57
N_HIDDEN = 128
N_CATEGORIES = 18
BATCH = 1                           # the tutorial always uses batch = 1
LANE = 128
O_PAD = LANE                        # logits padded to one full lane width
FUSED = N_HIDDEN + O_PAD            # 256 : [hidden | padded-logits]
NEG_BIG = -1e30                     # masks the padded logit lanes out of softmax


def _fused_rnn_kernel(idx_ref,                    # SMEM (L,) int32, prefetched
                      h0_ref,                     # (B, H)
                      w_in_ref,                   # (N_LETTERS, 1, FUSED) resident
                      w_hid_ref,                  # (H, FUSED)            resident
                      b_ref,                      # (1, FUSED)            resident
                      out_ref,                    # (1, B, O_PAD) block at step t
                      hfin_ref,                   # (B, H) final hidden output
                      h_sc):                      # VMEM scratch: hidden carry
    t = pl.program_id(0)

    @pl.when(t == 0)
    def _init():
        h_sc[...] = h0_ref[...]

    letter = idx_ref[t]
    h = h_sc[...]                                 # old hidden (B, H)

    # one_hot(letter) @ W  ==  a single row gather of the pre-transposed,
    # fused input-half weights; then ONE MXU pass for both i2h and i2o.
    fused = (w_in_ref[letter]                     # (1, FUSED)
             + jnp.dot(h, w_hid_ref[...],
                       preferred_element_type=jnp.float32)
             + b_ref[...])                        # (B, FUSED)

    new_h = fused[:, :N_HIDDEN]                   # (B, H)      lane-aligned slice
    logits = fused[:, N_HIDDEN:]                  # (B, O_PAD)  pad lanes ~ -1e30

    # numerically-stable log-softmax; padded lanes contribute exp(-1e30) == 0.
    m = jnp.max(logits, axis=-1, keepdims=True)
    shifted = logits - m
    lse = jnp.log(jnp.sum(jnp.exp(shifted), axis=-1, keepdims=True))
    out_ref[0] = (shifted - lse).astype(out_ref.dtype)

    h_sc[...] = new_h
    hfin_ref[...] = new_h.astype(hfin_ref.dtype)  # resident; written back once


def prepare_params(w_i2h, b_i2h, w_i2o, b_i2o):
    """One-time param prep (split / transpose / pad / fuse) hoisted out of the loop."""
    H, O = w_i2h.shape[0], w_i2o.shape[0]
    pad = O_PAD - O

    # Input (one-hot letter) halves, transposed to [in, out], fused i2h||i2o.
    wih_in = w_i2h[:, :N_LETTERS].T                                  # (57, H)
    wio_in = jnp.pad(w_i2o[:, :N_LETTERS].T, ((0, 0), (0, pad)))     # (57, O_PAD)
    w_in = jnp.concatenate([wih_in, wio_in], axis=1)                 # (57, FUSED)
    w_in = w_in.reshape(N_LETTERS, 1, H + O_PAD)                     # (57, 1, 256)

    # Hidden halves, transposed to [in, out], fused i2h||i2o.
    wih_hid = w_i2h[:, N_LETTERS:].T                                 # (H, H)
    wio_hid = jnp.pad(w_i2o[:, N_LETTERS:].T, ((0, 0), (0, pad)))    # (H, O_PAD)
    w_hid = jnp.concatenate([wih_hid, wio_hid], axis=1)              # (H, FUSED)

    # Fused bias; padded logit lanes get -1e30 so they vanish from softmax.
    bio = jnp.concatenate([b_i2o, jnp.full((pad,), NEG_BIG, jnp.float32)])
    b = jnp.concatenate([b_i2h, bio]).reshape(1, H + O_PAD)          # (1, FUSED)
    return w_in, w_hid, b


def rnn_sequence(letter_idx, h0, prepared):
    """Run the RNN over a whole sequence of letter indices in ONE pallas_call.

    letter_idx: (L,)  int32 character indices (one-hot exploited in-kernel)
    h0:         (B, N_HIDDEN) f32 initial hidden
    returns (log_probs (L, B, N_CATEGORIES), final_hidden (B, N_HIDDEN))
    """
    w_in, w_hid, b = prepared
    L = letter_idx.shape[0]
    B, H = h0.shape
    F = H + O_PAD

    # Resident blocks: same block every grid step -> DMA'd once, stay in VMEM.
    resident = lambda shape: pl.BlockSpec(shape, lambda t, idx: (0,) * len(shape))

    out_pad, h_final = pl.pallas_call(
        _fused_rnn_kernel,
        out_shape=(
            jax.ShapeDtypeStruct((L, B, O_PAD), jnp.float32),
            jax.ShapeDtypeStruct((B, H), jnp.float32),
        ),
        grid_spec=pltpu.PrefetchScalarGridSpec(
            num_scalar_prefetch=1,                    # letter_idx -> SMEM
            grid=(L,),
            in_specs=[
                resident((B, H)),                     # h0
                resident((N_LETTERS, 1, F)),          # w_in  (fused i2h||i2o)
                resident((H, F)),                     # w_hid (fused i2h||i2o)
                resident((1, F)),                     # b     (fused i2h||i2o)
            ],
            out_specs=(
                pl.BlockSpec((1, B, O_PAD), lambda t, idx: (t, 0, 0)),
                pl.BlockSpec((B, H), lambda t, idx: (0, 0)),
            ),
            scratch_shapes=[pltpu.VMEM((B, H), jnp.float32)],
        ),
        compiler_params=pltpu.CompilerParams(
            dimension_semantics=("arbitrary",)),      # time is inherently serial
    )(letter_idx, h0, w_in, w_hid, b)

    return out_pad[:, :, :N_CATEGORIES], h_final


def init_params(key, input_size, hidden_size, output_size):
    """Deterministic init mimicking nn.Linear's U(-1/sqrt(fan_in), 1/sqrt(fan_in))."""
    k1, k2, k3, k4 = jax.random.split(key, 4)
    fan_in = input_size + hidden_size
    bound = 1.0 / jnp.sqrt(jnp.float32(fan_in))
    w_i2h = jax.random.uniform(k1, (hidden_size, fan_in), jnp.float32, -bound, bound)
    b_i2h = jax.random.uniform(k2, (hidden_size,), jnp.float32, -bound, bound)
    w_i2o = jax.random.uniform(k3, (output_size, fan_in), jnp.float32, -bound, bound)
    b_i2o = jax.random.uniform(k4, (output_size,), jnp.float32, -bound, bound)
    return w_i2h, b_i2h, w_i2o, b_i2o


if __name__ == "__main__":
    key = jax.random.PRNGKey(0)
    w_i2h, b_i2h, w_i2o, b_i2o = init_params(key, N_LETTERS, N_HIDDEN, N_CATEGORIES)
    prepared = prepare_params(w_i2h, b_i2h, w_i2o, b_i2o)

    # lineToTensor('Albert') -> sequence of letter indices (one-hot handled
    # in-kernel as a row gather).
    line = "Albert"
    letter_idx = jnp.array([ALL_LETTERS.find(c) for c in line], dtype=jnp.int32)
    h0 = jnp.zeros((BATCH, N_HIDDEN), jnp.float32)          # initHidden()

    run = jax.jit(rnn_sequence)
    out, h_final = run(letter_idx, h0, prepared)
    jax.block_until_ready((out, h_final))

    # Plain-JAX reference: the PyTorch forward applied character by character.
    h = h0
    ref_outs = []
    for t in range(len(line)):
        inp = jax.nn.one_hot(letter_idx[t:t + 1], N_LETTERS, dtype=jnp.float32)
        combined = jnp.concatenate([inp, h], axis=1)
        new_h = combined @ w_i2h.T + b_i2h
        logits = combined @ w_i2o.T + b_i2o
        ref_outs.append(jax.nn.log_softmax(logits, axis=1))
        h = new_h
    ref_out = jnp.stack(ref_outs)                           # (L, 1, 18)

    assert out.shape == (len(line), BATCH, N_CATEGORIES)
    assert h_final.shape == (BATCH, N_HIDDEN)
    assert jnp.allclose(out, ref_out, atol=1e-4), "log-softmax output mismatch"
    assert jnp.allclose(h_final, h, atol=1e-4), "final hidden mismatch"

    print("KERNEL_OK")
</pallas_src>

<mosaic_0001>
module attributes {stable_mosaic.version = 11 : i64} {
  func.func @_fused_rnn_kernel(%arg0: i32, %arg1: memref<6xi32, #tpu.memory_space<smem>>, %arg2: memref<1x128xf32, #tpu.memory_space<vmem>>, %arg3: memref<57x1x256xf32, #tpu.memory_space<vmem>>, %arg4: memref<128x256xf32, #tpu.memory_space<vmem>>, %arg5: memref<1x256xf32, #tpu.memory_space<vmem>>, %arg6: memref<1x1x128xf32, #tpu.memory_space<vmem>>, %arg7: memref<1x128xf32, #tpu.memory_space<vmem>>, %arg8: memref<1x128xf32, #tpu.memory_space<vmem>>) attributes {dimension_semantics = [#tpu.dimension_semantics<arbitrary>], iteration_bounds = array<i64: 6>, scalar_prefetch = 1 : i64, scratch_operands = 1 : i64, tpu.core_type = #tpu.core_type<tc>, window_params = [{pipeline_mode = #tpu.pipeline_mode<synchronous>, transform_indices = @transform_0, window_bounds = array<i64: 1, 128>}, {pipeline_mode = #tpu.pipeline_mode<synchronous>, transform_indices = @transform_1, window_bounds = array<i64: 57, 1, 256>}, {pipeline_mode = #tpu.pipeline_mode<synchronous>, transform_indices = @transform_2, window_bounds = array<i64: 128, 256>}, {pipeline_mode = #tpu.pipeline_mode<synchronous>, transform_indices = @transform_3, window_bounds = array<i64: 1, 256>}, {transform_indices = @transform_4, window_bounds = array<i64: 1, 1, 128>}, {pipeline_mode = #tpu.pipeline_mode<synchronous>, transform_indices = @transform_5, window_bounds = array<i64: 1, 128>}]} {
    %c0_i32 = arith.constant 0 : i32
    %0 = arith.cmpi eq, %arg0, %c0_i32 : i32
    %1 = arith.extui %0 : i1 to i32
    %c0_i32_0 = arith.constant 0 : i32
    %2 = arith.cmpi ne, %1, %c0_i32_0 : i32
    scf.if %2 {
      %c0_17 = arith.constant 0 : index
      %c0_18 = arith.constant 0 : index
      %31 = vector.load %arg2[%c0_17, %c0_18] : memref<1x128xf32, #tpu.memory_space<vmem>>, vector<1x128xf32>
      %c0_19 = arith.constant 0 : index
      %c0_20 = arith.constant 0 : index
      %32 = vector.load %arg8[%c0_19, %c0_20] : memref<1x128xf32, #tpu.memory_space<vmem>>, vector<1x128xf32>
      tpu.vector_store %arg8[%c0_19, %c0_20], %31 {strides = array<i32>} : memref<1x128xf32, #tpu.memory_space<vmem>>, vector<1x128xf32>,
    } else {
    }
    %3 = arith.index_cast %arg0 : i32 to index
    %4 = memref.load %arg1[%3] : memref<6xi32, #tpu.memory_space<smem>>
    %c0 = arith.constant 0 : index
    %c0_1 = arith.constant 0 : index
    %5 = vector.load %arg8[%c0, %c0_1] : memref<1x128xf32, #tpu.memory_space<vmem>>, vector<1x128xf32>
    %6 = arith.index_cast %4 : i32 to index
    %c0_2 = arith.constant 0 : index
    %c0_3 = arith.constant 0 : index
    %7 = vector.load %arg3[%6, %c0_2, %c0_3] : memref<57x1x256xf32, #tpu.memory_space<vmem>>, vector<1x1x256xf32>
    %8 = vector.shape_cast %7 : vector<1x1x256xf32> to vector<1x256xf32>
    %c0_4 = arith.constant 0 : index
    %c0_5 = arith.constant 0 : index
    %9 = vector.load %arg4[%c0_4, %c0_5] : memref<128x256xf32, #tpu.memory_space<vmem>>, vector<128x256xf32>
    %cst = arith.constant dense<0.000000e+00> : vector<1x256xf32>
    %10 = tpu.matmul %5, %9, %cst {dimension_numbers = #tpu.dot_dimension_numbers<[1], [0], [0], [1], [0, 0, 1, 1], [], []>} : vector<1x128xf32>, vector<128x256xf32>, vector<1x256xf32> -> vector<1x256xf32>
    %11 = arith.addf %8, %10 : vector<1x256xf32>
    %c0_6 = arith.constant 0 : index
    %c0_7 = arith.constant 0 : index
    %12 = vector.load %arg5[%c0_6, %c0_7] : memref<1x256xf32, #tpu.memory_space<vmem>>, vector<1x256xf32>
    %13 = arith.addf %11, %12 : vector<1x256xf32>
    %14 = vector.extract_strided_slice %13 {offsets = [0, 0], sizes = [1, 128], strides = [1, 1]} : vector<1x256xf32> to vector<1x128xf32>
    %15 = vector.extract_strided_slice %13 {offsets = [0, 128], sizes = [1, 128], strides = [1, 1]} : vector<1x256xf32> to vector<1x128xf32>
    %cst_8 = arith.constant dense<0xFF800000> : vector<1xf32>
    %16 = vector.multi_reduction <maximumf>, %15, %cst_8 [1] : vector<1x128xf32> to vector<1xf32>
    %17 = vector.shape_cast %16 : vector<1xf32> to vector<1x1xf32>
    %18 = vector.broadcast %17 : vector<1x1xf32> to vector<1x128xf32>
    %19 = arith.subf %15, %18 : vector<1x128xf32>
    %20 = math.exp %19 : vector<1x128xf32>
    %cst_9 = arith.constant dense<0.000000e+00> : vector<1xf32>
    %21 = vector.multi_reduction <add>, %20, %cst_9 [1] : vector<1x128xf32> to vector<1xf32>
    %22 = vector.shape_cast %21 : vector<1xf32> to vector<1x1xf32>
    %23 = math.log %22 : vector<1x1xf32>
    %24 = vector.broadcast %23 : vector<1x1xf32> to vector<1x128xf32>
    %25 = arith.subf %19, %24 : vector<1x128xf32>
    %c0_10 = arith.constant 0 : index
    %c0_11 = arith.constant 0 : index
    %c0_12 = arith.constant 0 : index
    %26 = vector.load %arg6[%c0_10, %c0_11, %c0_12] : memref<1x1x128xf32, #tpu.memory_space<vmem>>, vector<1x1x128xf32>
    %27 = vector.shape_cast %26 : vector<1x1x128xf32> to vector<1x128xf32>
    %28 = vector.shape_cast %25 : vector<1x128xf32> to vector<1x1x128xf32>
    tpu.vector_store %arg6[%c0_10, %c0_11, %c0_12], %28 {strides = array<i32>} : memref<1x1x128xf32, #tpu.memory_space<vmem>>, vector<1x1x128xf32>,
    %c0_13 = arith.constant 0 : index
    %c0_14 = arith.constant 0 : index
    %29 = vector.load %arg8[%c0_13, %c0_14] : memref<1x128xf32, #tpu.memory_space<vmem>>, vector<1x128xf32>
    tpu.vector_store %arg8[%c0_13, %c0_14], %14 {strides = array<i32>} : memref<1x128xf32, #tpu.memory_space<vmem>>, vector<1x128xf32>,
    %c0_15 = arith.constant 0 : index
    %c0_16 = arith.constant 0 : index
    %30 = vector.load %arg7[%c0_15, %c0_16] : memref<1x128xf32, #tpu.memory_space<vmem>>, vector<1x128xf32>
    tpu.vector_store %arg7[%c0_15, %c0_16], %14 {strides = array<i32>} : memref<1x128xf32, #tpu.memory_space<vmem>>, vector<1x128xf32>,
    return
  }
  func.func @transform_0(%arg0: i32, %arg1: memref<6xi32, #tpu.memory_space<smem>>) -> (i32, i32) {
    %c0_i32 = arith.constant 0 : i32
    %c0_i32_0 = arith.constant 0 : i32
    %c0_i32_1 = arith.constant 0 : i32
    return %c0_i32, %c0_i32_0 : i32, i32
  }
  func.func @transform_1(%arg0: i32, %arg1: memref<6xi32, #tpu.memory_space<smem>>) -> (i32, i32, i32) {
    %c0_i32 = arith.constant 0 : i32
    %c0_i32_0 = arith.constant 0 : i32
    %c0_i32_1 = arith.constant 0 : i32
    %c0_i32_2 = arith.constant 0 : i32
    return %c0_i32, %c0_i32_0, %c0_i32_1 : i32, i32, i32
  }
  func.func @transform_2(%arg0: i32, %arg1: memref<6xi32, #tpu.memory_space<smem>>) -> (i32, i32) {
    %c0_i32 = arith.constant 0 : i32
    %c0_i32_0 = arith.constant 0 : i32
    %c0_i32_1 = arith.constant 0 : i32
    return %c0_i32, %c0_i32_0 : i32, i32
  }
  func.func @transform_3(%arg0: i32, %arg1: memref<6xi32, #tpu.memory_space<smem>>) -> (i32, i32) {
    %c0_i32 = arith.constant 0 : i32
    %c0_i32_0 = arith.constant 0 : i32
    %c0_i32_1 = arith.constant 0 : i32
    return %c0_i32, %c0_i32_0 : i32, i32
  }
  func.func @transform_4(%arg0: i32, %arg1: memref<6xi32, #tpu.memory_space<smem>>) -> (i32, i32, i32) {
    %c0_i32 = arith.constant 0 : i32
    %c0_i32_0 = arith.constant 0 : i32
    %c0_i32_1 = arith.constant 0 : i32
    return %arg0, %c0_i32, %c0_i32_0 : i32, i32, i32
  }
  func.func @transform_5(%arg0: i32, %arg1: memref<6xi32, #tpu.memory_space<smem>>) -> (i32, i32) {
    %c0_i32 = arith.constant 0 : i32
    %c0_i32_0 = arith.constant 0 : i32
    %c0_i32_1 = arith.constant 0 : i32
    return %c0_i32, %c0_i32_0 : i32, i32
  }
}

</mosaic_0001>

<bundles_post_ra>
// kernel: rnn_sequence.1
= control target key start
LH: loop header
LB: loop body
LE: loop exit
PB: predicated region body
PF: predicated region fallthrough
CT: control target
= control target key end

     0   :  { %s792_s24 = smov [#allocation4]   ;;  %s986_s0 = inlined_call_operand.hbm [shape: s32[6], index: 0, kind: input, shape index: {}]   ;;  %s987_s1 = inlined_call_operand.hbm [shape: f32[1,128], index: 1, kind: input, shape index: {}]   ;;  %s988_s2 = inlined_call_operand.hbm [shape: f32[57,1,256], index: 2, kind: input, shape index: {}]   ;;  %s989_s3 = inlined_call_operand.hbm [shape: f32[128,256], index: 3, kind: input, shape index: {}]   ;;  %s990_s4 = inlined_call_operand.vmem [shape: f32[1,256], index: 4, kind: input, shape index: {}]   ;;  %s991_s5 = inlined_call_operand.hbm [shape: f32[6,1,128], index: 5, kind: output, shape index: {0}]   ;;  %s992_s6 = inlined_call_operand.hbm [shape: f32[1,128], index: 6, kind: output, shape index: {1}]  }
   0x1   :  { %s13_s23 = sshll.u32 %s986_s0, 4  ;;  %s14_s23 = int_to_ptr.hbm [resolvable:$true] %s13_s23 }
   0x2   :  { %16 = dma.hbm_to_smem %s14_s23, 16, %s792_s24, [#allocation3] }
   0x3   :  { %758 = dma.done.wait [#allocation3], 16 }
   0x4   :  { %759 = vsyncadd [#allocation3], 4294967280 }
   0x5   :  { %19 = sfence }
   0x6   :  { %20 = vsyncpa [#allocation6], 0 }
   0x7   :  { %21 = vsyncpa [#allocation9], 0 }
   0x8   :  { %22 = vsyncpa [#allocation7], 0 }
   0x9   :  { %24 = vsyncpa [#allocation7 + $0x1], 0 }
   0xa   :  { %25 = vsyncpa [#allocation13], 0  ;;  %s839_s25 = smov 0   ;;  %s841_s26 = smov 0  }
   0xb   :  { %s843_s27 = smov 0   ;;  %s845_s28 = smov 0  }
   0xc LB: > { %s860_s0 = sadd.s32 4294967295, %s790_s28   ;;  %s483_s29 = sadd.s32 4294967294, %s790_s28   ;;  %s790_s28 = sphi %s845_s28, %s1000_s28   ;;  %s786_s27 = sphi %s843_s27, %s999_s27   ;;  %s782_s26 = sphi %s841_s26, %s998_s26   ;;  %s778_s25 = sphi %s839_s25, %s997_s25  }
   0xd   : > { %s864_s30 = sadd.s32 1, %s790_s28   ;;  %s122_s7 = sadd.s32 1, %s786_s27 }
   0xe   : > { %s119_s8 = ssub.s32 %s790_s28, %s864_s30  ;;  %p132_p0 = scmp.ne.s32.totalorder %s786_s27, %s782_s26 }
   0xf   : > { %p120_p1 = scmp.eq.s32.totalorder %s119_s8, 0  ;;  %p133_p2 = scmp.eq.s32.totalorder %s860_s0, 5 }
  0x10   : > { %p138_p3 = scmp.ne.s32.totalorder %s782_s26, %s778_s25  ;;  %p139_p4 = scmp.eq.s32.totalorder %s483_s29, 5 }
  0x11   : > { %s875_s9 = scalar_select %p120_p1, %s786_s27, %s122_s7  }
  0x12   : > { %p879_p5 = por %p133_p2, %p132_p0  ;;  %p883_p6 = por %p139_p4, %p138_p3 }
  0x13   : > { %p484_p7 = scmp.ge.s32.totalorder %s790_s28, 1  ;;  %p167_p8 = scmp.lt.s32.totalorder %s790_s28, 7 }
  0x14   : > { %p485_p9 = scmp.ne.s32.totalorder %s860_s0, 0  ;;  %p530_p10 = scmp.eq.s32.totalorder %s860_s0, 0 }
  0x15   : > { %p891_p11 = pnand %p484_p7, %p167_p8  ;;  %s190_s15 = sshll.u32 %s988_s2, 4  ;;  %s191_s15 = int_to_ptr.hbm [resolvable:$true] %s190_s15 }
  0x16   : > { %s793_s16 = smov [#allocation8]   ;;  %s179_s21 = sshll.u32 %s987_s1, 4  ;;  %s180_s21 = int_to_ptr.hbm [resolvable:$true] %s179_s21 }
  0x17   : > { %p516_p12 = pneg %p891_p11  ;;  %s192_s17 = sshll.u32 %s793_s16, 4  ;;  %s193_s17 = int_to_ptr.vmem [resolvable:$true] %s192_s17 }
  0x18   : > { %s794_s22 = smov 32   ;;  %s795_s23 = smov 2  }
  0x19   : > { %p902_p13 = pnand %p530_p10, %p516_p12  ;;  %s796_s24 = smov [#allocation5]  }
  0x1a   : > { %s181_s29 = sshll.u32 %s796_s24, 4  ;;  %s204_s13 = sshll.u32 %s989_s3, 4  ;;  %s182_s29 = int_to_ptr.vmem [resolvable:$true] %s181_s29  ;;  %s205_s13 = int_to_ptr.hbm [resolvable:$true] %s204_s13 }
  0x1b   : > { %522 = dma.hbm_to_vmem [thread:$0]  (!%p902_p13), %s191_s15, 1824, %s193_s17, [#allocation9], %s794_s22, %s794_s22, %s795_s23  }
  0x1c   : > { %519 = dma.hbm_to_vmem [thread:$0]  (!%p902_p13), %s180_s21, 16, %s182_s29, [#allocation6]  }
  0x1d   : > { %s797_s14 = smov [#allocation10]   ;;  %s798_s19 = smov 256  }
  0x1e   : > { %s206_s16 = sshll.u32 %s797_s14, 4  ;;  %s799_s20 = smov 16   ;;  %s207_s16 = int_to_ptr.vmem [resolvable:$true] %s206_s16 }
  0x1f   : > { %525 = dma.hbm_to_vmem [thread:$0]  (!%p902_p13), %s205_s13, 4096, %s207_s16, [#allocation9], %s798_s19, %s798_s19, %s799_s20  }
  0x20   : > { %225 = sbr.rel (%p891_p11) target bundleno = 475 (0x1db), region = 36 }
  0x25   : > { %761 = dma.done.wait (%p530_p10), [#allocation6], 16  }
  0x26   : > { %763 = vsyncadd (%p530_p10), [#allocation6], 4294967280 }
  0x27   : > { %765 = dma.done.wait (%p530_p10), [#allocation9], 5920  }
  0x28   : > { %767 = vsyncadd (%p530_p10), [#allocation9], 4294961376  ;;  %s254_s15 = sand.u32 1, %s782_s26   ;;  %261 = sbr.rel (%p485_p9) target bundleno = 47 (0x2f), region = 52 }
  0x29   : > { %s931_s17 = scalar_lea.vmem [#allocation11], %s254_s15 }
  0x2d   : > { %v262_v0 = vld [vmem:[#allocation5] sm:$0x1] }
  0x2e   : > { %263 = vst [vmem:[#allocation2] sm:$0x1] %v262_v0 }
  0x2f PF: > { %v300_v1 = vld [vmem:[#allocation10 + $0xf8] sm:$0xff]  ;;  %v299_v2 = vld [vmem:[#allocation10 + $0xf0] sm:$0xff]  ;;  %v298_v3 = vld [vmem:[#allocation10 + $0xe8] sm:$0xff]  ;;  %s264_s12 = sld [smem:[#allocation4 + %s860_s0]]  ;;  %vm344_vm0 = vcmask 1040384   ;;  %s800_s24 = smov [#allocation12]  }
  0x30   : > { %321 = vmatpush.msra.mxu1 %v300_v1  ;;  %301 = vmatpush.msra.mxu0 %v299_v2  ;;  %v297_v4 = vld [vmem:[#allocation10 + $0xe0] sm:$0xff]  ;;  %v296_v5 = vld [vmem:[#allocation10 + $0xd8] sm:$0xff]  ;;  %v295_v6 = vld [vmem:[#allocation10 + $0xd0] sm:$0xff]  ;;  %s393_s29 = sshll.u32 %s800_s24, 4  ;;  %s395_s13 = sshll.u32 %s992_s6, 4  ;;  %s394_s29 = int_to_ptr.vmem [resolvable:$true] %s393_s29  ;;  %s396_s13 = int_to_ptr.hbm [resolvable:$true] %s395_s13 }
  0x31   : > { %v294_v7 = vld [vmem:[#allocation10 + $0xc8] sm:$0xff]  ;;  %v293_v8 = vld [vmem:[#allocation10 + $0xc0] sm:$0xff]  ;;  %v292_v9 = vld [vmem:[#allocation10 + $0xb8] sm:$0xff]  ;;  %s379_s19 = scalar_lea.hbm %s991_s5, %s860_s0  ;;  %s381_s20 = sshll.u32 %s931_s17, 4  ;;  %s382_s20 = int_to_ptr.vmem [resolvable:$true] %s381_s20 }
  0x32   : > { %322 = vmatpush.msra.mxu1 %v298_v3  ;;  %302 = vmatpush.msra.mxu0 %v297_v4  ;;  %v291_v10 = vld [vmem:[#allocation10 + $0xb0] sm:$0xff]  ;;  %v290_v11 = vld [vmem:[#allocation10 + $0xa8] sm:$0xff]  ;;  %v289_v12 = vld [vmem:[#allocation10 + $0xa0] sm:$0xff] }
  0x33   : > { %v288_v13 = vld [vmem:[#allocation10 + $0x98] sm:$0xff]  ;;  %v287_v14 = vld [vmem:[#allocation10 + $0x90] sm:$0xff]  ;;  %v286_v15 = vld [vmem:[#allocation10 + $0x88] sm:$0xff] }
  0x34   : > { %323 = vmatpush.msra.mxu1 %v296_v5  ;;  %303 = vmatpush.msra.mxu0 %v295_v6  ;;  %v285_v16 = vld [vmem:[#allocation10 + $0x80] sm:$0xff]  ;;  %v284_v17 = vld [vmem:[#allocation10 + $0x78] sm:$0xff]  ;;  %v283_v18 = vld [vmem:[#allocation10 + $0x70] sm:$0xff] }
  0x35   : > { %v282_v19 = vld [vmem:[#allocation10 + $0x68] sm:$0xff]  ;;  %v281_v20 = vld [vmem:[#allocation10 + $0x60] sm:$0xff]  ;;  %v280_v21 = vld [vmem:[#allocation10 + $0x58] sm:$0xff]  ;;  %s493_s18 = sshll.u32 %s264_s12, 1  ;;  %s383_s12 = sshll.u32 %s379_s19, 4  ;;  %s384_s12 = int_to_ptr.hbm [resolvable:$true] %s383_s12 }
  0x36   : > { %324 = vmatpush.msra.mxu1 %v294_v7  ;;  %304 = vmatpush.msra.mxu0 %v293_v8  ;;  %v279_v22 = vld [vmem:[#allocation10 + $0x50] sm:$0xff]  ;;  %v278_v23 = vld [vmem:[#allocation10 + $0x48] sm:$0xff]  ;;  %v277_v24 = vld [vmem:[#allocation10 + $0x40] sm:$0xff]  ;;  %s267_s21 = scalar_lea.vmem [#allocation8], %s493_s18  ;;  %s371_s18 = scalar_lea.sflag [#allocation7], %s254_s15 }
  0x37   : > { %v276_v25 = vld [vmem:[#allocation10 + $0x38] sm:$0xff]  ;;  %v275_v26 = vld [vmem:[#allocation10 + $0x30] sm:$0xff]  ;;  %v274_v27 = vld [vmem:[#allocation10 + $0x28] sm:$0xff] }
  0x38   : > { %325 = vmatpush.msra.mxu1 %v292_v9  ;;  %305 = vmatpush.msra.mxu0 %v291_v10  ;;  %v273_v28 = vld [vmem:[#allocation10 + $0x20] sm:$0xff]  ;;  %v272_v29 = vld [vmem:[#allocation10 + $0x18] sm:$0xff]  ;;  %v271_v30 = vld [vmem:[#allocation10 + $0x10] sm:$0xff] }
  0x39   : > { %v270_v31 = vld [vmem:[#allocation10 + $0x8] sm:$0xff]  ;;  %v269_v32 = vld [vmem:[#allocation10] sm:$0xff] }
  0x3a   : > { %326 = vmatpush.msra.mxu1 %v290_v11  ;;  %306 = vmatpush.msra.mxu0 %v289_v12  ;;  %v265_v33 = vld [vmem:[#allocation2] sm:$0x1] }
  0x3b   : > { %v268_v37 = vld [vmem:[%s267_s21] sm:$0x3]  ;;  %s728_s21 = sshra.s32 %s384_s12, 4  ;;  %s729_s21 = int_to_ptr.hbm [resolvable:$true] %s728_s21 }
  0x3c   : > { %327 = vmatpush.msra.mxu1 %v288_v13  ;;  %307 = vmatpush.msra.mxu0 %v287_v14  ;;  %v348_v39 = vld [vmem:[%s990_s4] sm:$0x3]  ;;  %s730_s22 = scalar_lea.hbm %s729_s21, 1  ;;  %p735_p4 = scmp.lt.s32.totalorder %s729_s21, %s991_s5 }
  0x3d   : > { %p731_p0 = scmp.ne.s32.totalorder %s729_s21, %s730_s22 }
  0x3e   : > { %328 = vmatpush.msra.mxu1 %v286_v15  ;;  %308 = vmatpush.msra.mxu0 %v285_v16 }
  0x3f   : > { %p732_p1 = pnand %p731_p0, %p879_p5 }
  0x40   : > { %329 = vmatpush.msra.mxu1 %v284_v17  ;;  %309 = vmatpush.msra.mxu0 %v283_v18 }
  0x41   : > { %p733_p3 = pneg %p732_p1 }
  0x42   : > { %330 = vmatpush.msra.mxu1 %v282_v19  ;;  %310 = vmatpush.msra.mxu0 %v281_v20 }
  0x44   : > { %331 = vmatpush.msra.mxu1 %v280_v21  ;;  %311 = vmatpush.msra.mxu0 %v279_v22 }
  0x46   : > { %332 = vmatpush.msra.mxu1 %v278_v23  ;;  %312 = vmatpush.msra.mxu0 %v277_v24 }
  0x48   : > { %333 = vmatpush.msra.mxu1 %v276_v25  ;;  %313 = vmatpush.msra.mxu0 %v275_v26 }
  0x4a   : > { %334 = vmatpush.msra.mxu1 %v274_v27  ;;  %314 = vmatpush.msra.mxu0 %v273_v28 }
  0x4c   : > { %335 = vmatpush.msra.mxu1 %v272_v29  ;;  %315 = vmatpush.msra.mxu0 %v271_v30 }
  0x4e   : > { %336 = vmatpush.msra.mxu1 %v270_v31  ;;  %316 = vmatpush.msra.mxu0 %v269_v32 }
  0x4f   : > { %337 = vmatmul.f32.vlgmr.msra.gmra.mxu1 %v265_v33  ;;  %317 = vmatmul.f32.vlgmr.msra.gmra.mxu0 %v265_v33 }
  0xcc   : > { %v338_v34 = vpop.f32.mrf.mxu1  ;;  %v318_v35 = vpop.f32.mrf.mxu0 }
  0xcd   : > { %v343_v36 = vrot.slane %v338_v34, 7 }
  0xcf   : > { %v345_v38 = vsel %vm344_vm0, %v318_v35, %v343_v36 }
  0xd0   : > { %v347_v40 = vadd.f32 %v345_v38, %v268_v37 }
  0xd2   : > { %v349_v41 = vadd.f32 %v348_v39, %v347_v40 }
  0xd4   : > { %368 = vst [vmem:[#allocation2] sm:$0x1] %v349_v41  ;;  %v351_v42 = vperm.slane %v349_v41, 1  ;;  %v356_v44 = vrot.slane %v349_v41, 1 }
  0xd5   : > { %369 = vst [vmem:[#allocation12] sm:$0x1] %v349_v41 }
  0xd6   : > { %v353_v43 = vsel %vm344_vm0, %v351_v42, -inf  ;;  %512 = dma.vmem_to_hbm [thread:$0]  (%p133_p2), %s394_s29, 16, %s396_s13, [#allocation13]  }
  0xd7   : > { %354 = vmax.xlane.f32.xlu0 %v353_v43  ;;  %s734_s29 = scalar_lea.hbm %s991_s5, 6 }
  0xd8   : > { %p736_p7 = scmp.lt.s32.totalorder %s734_s29, %s730_s22 }
  0xda   : > { %p737_p8 = por %p736_p7, %p735_p4 }
  0xdc   : > { %p738_p9 = pnand %p737_p8, %p733_p3 }
 0x14a   : > { %v355_v45 = vpop.xlane.xlu0 %354 }
 0x14b   : > { %v358_v46 = vsub.f32 %v356_v44, %v355_v45 }
 0x14d   : > { %v359_v47 = vmul.f32 1.442695, %v358_v46 }
 0x14f   : > { %580 = vpow2.f32 %v359_v47 }
 0x155   : > { %v581_v48 = vpop.eup %580 }
 0x156   : > { %v361_v49 = vsel %vm344_vm0, %v581_v48, 0.0 }
 0x157   : > { %362 = vadd.xlane.f32.xlu0 %v361_v49 }
 0x1ca   : > { %v363_v50 = vpop.xlane.xlu0 %362 }
 0x1cb   : > { %582 = vlog2.f32 %v363_v50 }
 0x1d1   : > { %v583_v51 = vpop.eup %582 }
 0x1d2   : > { %v365_v52 = vmul.f32 0.6931472, %v583_v51 }
 0x1d4   : > { %v366_v53 = vsub.f32 %v358_v46, %v365_v52 }
 0x1d6   : > { %367 = vst [vmem:[%s931_s17] sm:$0x1] %v366_v53 }
 0x1d7   : > { %741 = shalt.err (!%p738_p9)
}
 0x1d8   : > { %510 = dma.vmem_to_hbm [thread:$0]  (%p879_p5), %s382_s20, 16, %s384_s12, %s371_s18  }
 0x1d9   : > { %769 = dma.done.wait (%p133_p2), [#allocation13], 16  }
 0x1da   : > { %771 = vsyncadd (%p133_p2), [#allocation13], 4294967280 }
 0x1db PF: > { %p538_p10 = scmp.ge.s32.totalorder %s790_s28, 2  ;;  %s412_s15 = sand.u32 1, %s778_s25  }
 0x1dc   : > { %s413_s17 = scalar_lea.sflag [#allocation7], %s412_s15 }
 0x1dd   : > { %p527_p11 = pnand %p538_p10, %p883_p6 }
 0x1df   : > { %p528_p12 = pneg %p527_p11 }
 0x1e1   : > { %773 = dma.done.wait (%p528_p12), %s413_s17, 16  }
 0x1e2   : > { %775 = vsyncadd (%p528_p12), %s413_s17, 4294967280  ;;  %p28_p5 = scmp.ge.s32.totalorder %s864_s30, 8   ;;  %s997_s25 = smov %s782_s26 }
 0x1e3   : > { %s998_s26 = smov %s786_s27  ;;  %s999_s27 = smov %s875_s9 }
 0x1e4   : > { %s1000_s28 = smov %s864_s30  ;;  %30 = sbr.rel (!%p28_p5) target bundleno = 12 (0xc), region = 94 }
 0x1e9   :  { %418 = vsyncpa [#allocation6], 1 }
 0x1ea   :  { %420 = vsyncpa [#allocation6 + $0x1], 1 }
 0x1eb   :  { %421 = vsyncpa [#allocation9], 1 }
 0x1ec   :  { %422 = vsyncpa [#allocation7], 1 }
 0x1ed   :  { %424 = vsyncpa [#allocation7 + $0x1], 1 }
 0x1ee   :  { %425 = vsyncpa [#allocation13], 1 }

</bundles_post_ra>
